<compile_context>
chip_gen: v6e
topology: v6e:2x2x1
jax: 0.10.0
libtpu: 0.0.40
codegen_flags: <defaults>
</compile_context>

<pallas_src>
import numpy as np

import jax
import jax.numpy as jnp
from jax import lax
from jax.experimental import pallas as pl
from jax.experimental.pallas import tpu as pltpu

DET_CROP = 32       # detector projection crop (square window)
REC_CROP = 24       # recognizer input crop (square window)
HIDDEN = 16         # conv feature width
NUM_CLASSES = 4     # detections[:, 5:9]; class 0 == "not a traffic light"
K_PAD = 32          # im2col patch dim (9*3 = 27) padded to 32
OUT_PAD = 128       # head output padded to full lane width (lane-dense store)


def _round_up8(n):
    return max(8, ((n + 7) // 8) * 8)


# ---------------------------------------------------------------------------
# Fused batched conv-net kernel: conv3x3 (transposed im2col GEMM) + bias + ReLU
# + global average pool (MXU) + per-crop branch selection + linear head.
# One grid step covers every crop.
# ---------------------------------------------------------------------------

def _convnet_batch_kernel(a_ref, cw_ref, cb_ref, poolt_ref, selt_ref,
                          hw_ref, hb_ref, o_ref):
    # conv3x3 as one transposed-im2col GEMM: (TH,K_PAD)@(K_PAD,TOT) -> (TH,TOT)
    # HW on the lane axis -> bias/ReLU touch fully occupied vregs.
    h = jnp.dot(cw_ref[...], a_ref[...], preferred_element_type=jnp.float32)
    h = jnp.maximum(h + cb_ref[...], 0.0)                    # stays in VMEM
    # global average pool on the MXU: NT matmul with a 0/1 crop-membership
    # matrix (1/HW is folded into head_w): (N_PAD,TOT) x (TH,TOT)^T -> (N_PAD,TH)
    pooled = lax.dot_general(poolt_ref[...], h, (((1,), (1,)), ((), ())),
                             preferred_element_type=jnp.float32)
    # per-crop classifier-branch mask, then the head as one lane-dense matmul
    pm = (pooled * selt_ref[...]).astype(jnp.bfloat16)
    o_ref[...] = jnp.dot(pm, hw_ref[...],
                         preferred_element_type=jnp.float32) + hb_ref[...]


def convnet_batch(a, conv_w, conv_b, pool_t, sel_t, head_w, head_b_rows):
    """Run the fused conv-net on all crops at once. Returns (N_PAD, OUT_PAD) f32."""
    k_pad, tot = a.shape
    th = conv_w.shape[0]
    n_pad = pool_t.shape[0]
    return pl.pallas_call(
        _convnet_batch_kernel,
        out_shape=jax.ShapeDtypeStruct((n_pad, OUT_PAD), jnp.float32),
        grid=(1,),
        in_specs=[
            pl.BlockSpec((k_pad, tot), lambda i: (0, 0)),      # im2col (bf16, lane-dense)
            pl.BlockSpec((th, k_pad), lambda i: (0, 0)),       # stacked conv weights (bf16)
            pl.BlockSpec((th, 1), lambda i: (0, 0)),           # conv bias (f32)
            pl.BlockSpec((n_pad, tot), lambda i: (0, 0)),      # crop-membership pool matrix
            pl.BlockSpec((n_pad, th), lambda i: (0, 0)),       # per-crop branch mask
            pl.BlockSpec((th, OUT_PAD), lambda i: (0, 0)),     # stacked head weights (bf16 * 1/HW)
            pl.BlockSpec((n_pad, OUT_PAD), lambda i: (0, 0)),  # per-crop head bias
        ],
        out_specs=pl.BlockSpec((n_pad, OUT_PAD), lambda i: (0, 0)),
        compiler_params=pltpu.CompilerParams(
            dimension_semantics=("arbitrary",)),   # single step: no megacore split
    )(a, conv_w, conv_b, pool_t, sel_t, head_w, head_b_rows)


# ---------------------------------------------------------------------------
# Host-side helpers (tiny; XLA-fused)
# ---------------------------------------------------------------------------

def im2col_3x3_T(crops):
    """crops: (N, S, S, C) f32 -> (K_PAD, N*S*S) bf16 patch matrix (SAME pad).

    Row k = (dy*3 + dx)*C + c ; column = n*S*S + y*S + x  (HW on the lane axis).
    """
    n, s, _, c = crops.shape
    xp = jnp.pad(crops.astype(jnp.bfloat16), ((0, 0), (1, 1), (1, 1), (0, 0)))
    rows = [xp[:, dy:dy + s, dx:dx + s, ch]
            for dy in range(3) for dx in range(3) for ch in range(c)]
    a = jnp.stack(rows, axis=0).reshape(9 * c, n * s * s)       # (27, TOT)
    return jnp.pad(a, ((0, K_PAD - 9 * c), (0, 0)))             # (K_PAD, TOT) bf16


def pool_matrix_t(n_crops, hw, n_pad):
    """(n_pad, n_crops*hw) f32 0/1 matrix: row n marks the columns of crop n."""
    crop_of_col = jnp.arange(n_crops * hw, dtype=jnp.int32)[None, :] // hw
    rows = jnp.arange(n_pad, dtype=jnp.int32)[:, None]
    return (crop_of_col == rows).astype(jnp.float32)


def gather_crops(img_hwc, xs, ys, size):
    """One vmapped dynamic_slice gather of (size, size, 3) crops."""
    def one(x, y):
        return jax.lax.dynamic_slice(img_hwc, (y, x, 0), (size, size, 3))
    return jax.vmap(one)(xs, ys)


def pairwise_iou(boxes):
    x1, y1, x2, y2 = boxes[:, 0], boxes[:, 1], boxes[:, 2], boxes[:, 3]
    area = jnp.maximum(x2 - x1, 0.0) * jnp.maximum(y2 - y1, 0.0)
    iw = jnp.maximum(jnp.minimum(x2[:, None], x2[None, :]) -
                     jnp.maximum(x1[:, None], x1[None, :]), 0.0)
    ih = jnp.maximum(jnp.minimum(y2[:, None], y2[None, :]) -
                     jnp.maximum(y1[:, None], y1[None, :]), 0.0)
    inter = iw * ih
    union = area[:, None] + area[None, :] - inter
    return inter / jnp.maximum(union, 1e-6)


def nms_greedy(scores, iou, thr):
    order = np.argsort(-scores)
    suppressed = np.zeros(len(scores), dtype=bool)
    keep = []
    for i in order:
        if suppressed[i]:
            continue
        keep.append(int(i))
        suppressed |= iou[i] > thr
        suppressed[i] = True
    return keep


def boxes2projections(boxes, img_h, img_w):
    # TODO(synk): original projects ROIs via camera geometry; here each
    # projection is a DET_CROP x DET_CROP window centered on the box center.
    projs = []
    for (x1, y1, x2, y2, bid) in boxes:
        cx, cy = 0.5 * (x1 + x2), 0.5 * (y1 + y2)
        px = int(np.clip(round(cx - DET_CROP / 2), 0, img_w - DET_CROP))
        py = int(np.clip(round(cy - DET_CROP / 2), 0, img_h - DET_CROP))
        projs.append((px, py, int(bid)))
    return projs


# ---------------------------------------------------------------------------
# Parameters
# ---------------------------------------------------------------------------

def init_convnet_params(key, out_dim):
    k1, k2, k3, k4 = jax.random.split(key, 4)
    return dict(
        conv_w=jax.random.normal(k1, (27, HIDDEN), jnp.float32) * 0.1,
        conv_b=jax.random.normal(k2, (HIDDEN,), jnp.float32) * 0.1,
        head_w=jax.random.normal(k3, (HIDDEN, out_dim), jnp.float32) * 0.1,
        head_b=jax.random.normal(k4, (out_dim,), jnp.float32) * 0.1,
    )


def prepare_convnet_params(params, crop_size):
    """One-time prep: conv_w -> (HIDDEN, K_PAD) bf16; fold 1/HW of the global
    average pool into head_w; pad the head to OUT_PAD lanes."""
    # TODO(synk): real PyTorch conv weights (C_out, C_in, kh, kw) must first be
    # permuted to the (kh, kw, C_in)-flattened row order used by im2col_3x3_T.
    out_dim = params["head_w"].shape[1]
    k_real = params["conv_w"].shape[0]
    conv_w = (jnp.zeros((HIDDEN, K_PAD), jnp.float32)
              .at[:, :k_real].set(params["conv_w"].T).astype(jnp.bfloat16))
    conv_b = params["conv_b"].astype(jnp.float32).reshape(HIDDEN, 1)
    inv_hw = 1.0 / float(crop_size * crop_size)
    head_w = (jnp.zeros((HIDDEN, OUT_PAD), jnp.float32)
              .at[:, :out_dim].set(params["head_w"] * inv_hw).astype(jnp.bfloat16))
    head_b = (jnp.zeros((1, OUT_PAD), jnp.float32)
              .at[:, :out_dim].set(params["head_b"].reshape(1, -1)))
    return dict(conv_w=conv_w, conv_b=conv_b, head_w=head_w, head_b=head_b,
                out_dim=out_dim)


# ---------------------------------------------------------------------------
# Pipeline
# ---------------------------------------------------------------------------

class Pipeline:
    """Detect + recognize a set of ROIs (fused, batched Pallas conv-net forward)."""

    def __init__(self, detector_params, classifier_params, ho,
                 means_det, means_rec, device=None, tracker=None):
        self.det = prepare_convnet_params(detector_params, DET_CROP)
        cls_prep = [prepare_convnet_params(p, REC_CROP) for p in classifier_params]
        self.n_types = len(cls_prep)
        # stack every classifier branch once so the recognizer is ONE pallas_call
        self.rec_conv_w = jnp.concatenate([p["conv_w"] for p in cls_prep], axis=0)
        self.rec_conv_b = jnp.concatenate([p["conv_b"] for p in cls_prep], axis=0)
        self.rec_head_w = jnp.concatenate([p["head_w"] for p in cls_prep], axis=0)
        self.rec_head_b = jnp.concatenate([p["head_b"] for p in cls_prep], axis=0)  # (T, OUT_PAD)
        self.rec_out_dim = cls_prep[0]["out_dim"]
        self.ho = ho
        self.means_det = jnp.asarray(means_det, jnp.float32)
        self.means_rec = jnp.asarray(means_rec, jnp.float32)
        self.device = device
        self.tracker = tracker   # TODO(synk): tracker is stateful host code, not ported

    # ------------------------------------------------------------------ detect
    def detect(self, img_hwc, boxes):
        h_img, w_img, _ = img_hwc.shape
        projections = boxes2projections(boxes, h_img, w_img)
        n = len(projections)
        xs = jnp.array([p[0] for p in projections], jnp.int32)
        ys = jnp.array([p[1] for p in projections], jnp.int32)
        crops = gather_crops(img_hwc, xs, ys, DET_CROP) - self.means_det   # preprocess4det
        a = im2col_3x3_T(crops)

        hw = DET_CROP * DET_CROP
        n_pad = _round_up8(n)
        pool_t = pool_matrix_t(n, hw, n_pad)
        sel_t = jnp.ones((n_pad, HIDDEN), jnp.float32)        # single detector branch
        hb = jnp.broadcast_to(self.det["head_b"], (n_pad, OUT_PAD))
        raw = convnet_batch(a, self.det["conv_w"], self.det["conv_b"], pool_t,
                            sel_t, self.det["head_w"], hb)[:n, :self.det["out_dim"]]

        # restore_boxes_to_full_image: score + box (crop coords -> image) + class logits
        score = jax.nn.sigmoid(raw[:, 0:1])
        bxy = jax.nn.sigmoid(raw[:, 1:5]) * DET_CROP
        offs = jnp.array([[px, py] for (px, py, _) in projections], jnp.float32)
        xa = jnp.minimum(bxy[:, 0:1], bxy[:, 2:3]) + offs[:, 0:1]
        xb = jnp.maximum(bxy[:, 0:1], bxy[:, 2:3]) + offs[:, 0:1]
        ya = jnp.minimum(bxy[:, 1:2], bxy[:, 3:4]) + offs[:, 1:2]
        yb = jnp.maximum(bxy[:, 1:2], bxy[:, 3:4]) + offs[:, 1:2]
        detections = jnp.concatenate(
            [score, xa, ya, xb, yb, raw[:, 5:5 + NUM_CLASSES]], axis=1).reshape(-1, 9)

        iou = pairwise_iou(detections[:, 1:5])
        scores_np, iou_np = jax.device_get((detections[:, 0], iou))   # single batched sync
        keep = nms_greedy(np.asarray(scores_np), np.asarray(iou_np), 0.6)
        return detections[jnp.array(keep, jnp.int32)]

    # --------------------------------------------------------------- recognize
    def recognize(self, img_hwc, valid_dets_np, tl_types_np):
        h_img, w_img, _ = img_hwc.shape
        n = valid_dets_np.shape[0]
        # TODO(synk): original resizes each detected box to the classifier input
        # shape; a fixed REC_CROP window anchored at the (clipped) box corner is used.
        xs = np.clip(valid_dets_np[:, 1], 0, w_img - REC_CROP).astype(np.int32)
        ys = np.clip(valid_dets_np[:, 2], 0, h_img - REC_CROP).astype(np.int32)
        crops = gather_crops(img_hwc, jnp.asarray(xs), jnp.asarray(ys), REC_CROP)
        crops = crops - self.means_rec                        # preprocess4rec
        a = im2col_3x3_T(crops)

        hw = REC_CROP * REC_CROP
        n_pad = _round_up8(n)
        pool_t = pool_matrix_t(n, hw, n_pad)
        # per-crop branch mask over the stacked (T*HIDDEN) feature rows + head bias
        branch = np.asarray(tl_types_np, np.int64) - 1        # 0-based classifier index
        sel_np = np.zeros((n_pad, self.n_types * HIDDEN), np.float32)
        for i, b in enumerate(branch):
            sel_np[i, int(b) * HIDDEN:(int(b) + 1) * HIDDEN] = 1.0
        sel_t = jnp.asarray(sel_np)
        branch_pad = np.zeros((n_pad,), np.int32)
        branch_pad[:n] = branch
        hb = self.rec_head_b[jnp.asarray(branch_pad)]          # (n_pad, OUT_PAD)

        out = convnet_batch(a, self.rec_conv_w, self.rec_conv_b, pool_t,
                            sel_t, self.rec_head_w, hb)        # ONE pallas_call
        return out[:n, :self.rec_out_dim]

    # --------------------------------------------------------------- select_tls
    def select_tls(self, valid_dets_np, projections):
        # TODO(synk): original uses a Hungarian-style optimizer (self.ho);
        # greedy nearest-projection-center assignment is used here.
        if valid_dets_np.shape[0] == 0:
            return jnp.zeros((0, 2), jnp.int32)
        assigns = []
        for di, d in enumerate(valid_dets_np):
            cx, cy = 0.5 * (d[1] + d[3]), 0.5 * (d[2] + d[4])
            dists = [(px + DET_CROP / 2 - cx) ** 2 + (py + DET_CROP / 2 - cy) ** 2
                     for (px, py, _) in projections]
            j = int(np.argmin(dists))
            assigns.append((di, projections[j][2]))
        return jnp.array(assigns, jnp.int32).reshape(-1, 2)

    # ------------------------------------------------------------------ forward
    def __call__(self, img_chw, boxes, frame_ts=None):
        if len(boxes) == 0:
            empty9 = jnp.zeros((0, 9), jnp.float32)
            empty4 = jnp.zeros((0, 4), jnp.float32)
            empty2 = jnp.zeros((0, 2), jnp.float32)
            revised = {} if self.tracker else None
            return empty9, empty4, empty2, empty9, revised

        img_hwc = jnp.transpose(img_chw.astype(jnp.float32), (1, 2, 0))  # CHW -> HWC
        detections = self.detect(img_hwc, boxes)
        tl_types = jnp.argmax(detections[:, 5:], axis=1)
        dets_np, tl_types_np = jax.device_get((detections, tl_types))    # single batched sync

        valid_mask = tl_types_np != 0
        valid_idx = np.nonzero(valid_mask)[0]
        invalid_idx = np.nonzero(~valid_mask)[0]
        valid_detections = detections[jnp.asarray(valid_idx, dtype=jnp.int32)]
        invalid_detections = detections[jnp.asarray(invalid_idx, dtype=jnp.int32)]

        projections = boxes2projections(boxes, img_hwc.shape[0], img_hwc.shape[1])
        assignments = self.select_tls(dets_np[valid_mask], projections)

        if valid_idx.shape[0] != 0:
            recognitions = self.recognize(img_hwc, dets_np[valid_mask],
                                          tl_types_np[valid_mask])
        else:
            recognitions = jnp.zeros((0, 4), jnp.float32)

        revised = None
        return valid_detections, recognitions, assignments, invalid_detections, revised


# ---------------------------------------------------------------------------
# Demo
# ---------------------------------------------------------------------------

if __name__ == "__main__":
    key = jax.random.PRNGKey(0)
    k_img, k_det, k_c1, k_c2, k_c3 = jax.random.split(key, 5)

    img = jax.random.uniform(k_img, (3, 64, 64), jnp.float32)   # [C, H, W]
    boxes = [[10.0, 12.0, 22.0, 30.0, 0],
             [30.0, 20.0, 44.0, 40.0, 1],
             [5.0, 40.0, 20.0, 60.0, 2]]

    means_det = jnp.array([0.45, 0.44, 0.41], jnp.float32)
    means_rec = jnp.array([0.50, 0.50, 0.50], jnp.float32)

    det_params = init_convnet_params(k_det, 5 + NUM_CLASSES)                 # detector -> 9 outputs
    cls_params = [init_convnet_params(k, 4) for k in (k_c1, k_c2, k_c3)]     # types 1..3 -> 4 outputs

    pipe = Pipeline(det_params, cls_params, ho=None,
                    means_det=means_det, means_rec=means_rec)

    valid_dets, recognitions, assignments, invalid_dets, revised = pipe(img, boxes)
    for o in (valid_dets, recognitions, assignments, invalid_dets):
        jax.block_until_ready(o)

    print("KERNEL_OK")
</pallas_src>

<mosaic_0001>
module attributes {stable_mosaic.version = 11 : i64} {
  func.func @_convnet_batch_kernel(%arg0: i32, %arg1: memref<32x3072xbf16, #tpu.memory_space<vmem>>, %arg2: memref<16x32xbf16, #tpu.memory_space<vmem>>, %arg3: memref<16x1xf32, #tpu.memory_space<vmem>>, %arg4: memref<8x3072xf32, #tpu.memory_space<vmem>>, %arg5: memref<8x16xf32, #tpu.memory_space<vmem>>, %arg6: memref<16x128xbf16, #tpu.memory_space<vmem>>, %arg7: memref<8x128xf32, #tpu.memory_space<vmem>>, %arg8: memref<8x128xf32, #tpu.memory_space<vmem>>) attributes {dimension_semantics = [#tpu.dimension_semantics<arbitrary>], iteration_bounds = array<i64: 1>, scalar_prefetch = 0 : i64, scratch_operands = 0 : i64, tpu.core_type = #tpu.core_type<tc>, window_params = [{pipeline_mode = #tpu.pipeline_mode<synchronous>, transform_indices = @transform_0, window_bounds = array<i64: 32, 3072>}, {pipeline_mode = #tpu.pipeline_mode<synchronous>, transform_indices = @transform_1, window_bounds = array<i64: 16, 32>}, {pipeline_mode = #tpu.pipeline_mode<synchronous>, transform_indices = @transform_2, window_bounds = array<i64: 16, 1>}, {pipeline_mode = #tpu.pipeline_mode<synchronous>, transform_indices = @transform_3, window_bounds = array<i64: 8, 3072>}, {pipeline_mode = #tpu.pipeline_mode<synchronous>, transform_indices = @transform_4, window_bounds = array<i64: 8, 16>}, {pipeline_mode = #tpu.pipeline_mode<synchronous>, transform_indices = @transform_5, window_bounds = array<i64: 16, 128>}, {pipeline_mode = #tpu.pipeline_mode<synchronous>, transform_indices = @transform_6, window_bounds = array<i64: 8, 128>}, {pipeline_mode = #tpu.pipeline_mode<synchronous>, transform_indices = @transform_7, window_bounds = array<i64: 8, 128>}]} {
    %c0 = arith.constant 0 : index
    %c0_0 = arith.constant 0 : index
    %0 = vector.load %arg2[%c0, %c0_0] : memref<16x32xbf16, #tpu.memory_space<vmem>>, vector<16x32xbf16>
    %c0_1 = arith.constant 0 : index
    %c0_2 = arith.constant 0 : index
    %1 = vector.load %arg1[%c0_1, %c0_2] : memref<32x3072xbf16, #tpu.memory_space<vmem>>, vector<32x3072xbf16>
    %cst = arith.constant dense<0.000000e+00> : vector<16x3072xf32>
    %2 = tpu.matmul %0, %1, %cst {dimension_numbers = #tpu.dot_dimension_numbers<[1], [0], [0], [1], [0, 0, 1, 1], [], []>} : vector<16x32xbf16>, vector<32x3072xbf16>, vector<16x3072xf32> -> vector<16x3072xf32>
    %c0_3 = arith.constant 0 : index
    %c0_4 = arith.constant 0 : index
    %3 = vector.load %arg3[%c0_3, %c0_4] : memref<16x1xf32, #tpu.memory_space<vmem>>, vector<16x1xf32>
    %4 = vector.broadcast %3 : vector<16x1xf32> to vector<16x3072xf32>
    %5 = arith.addf %2, %4 : vector<16x3072xf32>
    %cst_5 = arith.constant 0.000000e+00 : f32
    %6 = vector.broadcast %cst_5 : f32 to vector<16x3072xf32>
    %7 = arith.maximumf %5, %6 : vector<16x3072xf32>
    %c0_6 = arith.constant 0 : index
    %c0_7 = arith.constant 0 : index
    %8 = vector.load %arg4[%c0_6, %c0_7] : memref<8x3072xf32, #tpu.memory_space<vmem>>, vector<8x3072xf32>
    %cst_8 = arith.constant dense<0.000000e+00> : vector<8x16xf32>
    %9 = tpu.matmul %8, %7, %cst_8 {dimension_numbers = #tpu.dot_dimension_numbers<[1], [1], [0], [0], [0, 0, 1, 0], [], []>} : vector<8x3072xf32>, vector<16x3072xf32>, vector<8x16xf32> -> vector<8x16xf32>
    %c0_9 = arith.constant 0 : index
    %c0_10 = arith.constant 0 : index
    %10 = vector.load %arg5[%c0_9, %c0_10] : memref<8x16xf32, #tpu.memory_space<vmem>>, vector<8x16xf32>
    %11 = arith.mulf %9, %10 : vector<8x16xf32>
    %12 = arith.truncf %11 : vector<8x16xf32> to vector<8x16xbf16>
    %c0_11 = arith.constant 0 : index
    %c0_12 = arith.constant 0 : index
    %13 = vector.load %arg6[%c0_11, %c0_12] : memref<16x128xbf16, #tpu.memory_space<vmem>>, vector<16x128xbf16>
    %cst_13 = arith.constant dense<0.000000e+00> : vector<8x128xf32>
    %14 = tpu.matmul %12, %13, %cst_13 {dimension_numbers = #tpu.dot_dimension_numbers<[1], [0], [0], [1], [0, 0, 1, 1], [], []>} : vector<8x16xbf16>, vector<16x128xbf16>, vector<8x128xf32> -> vector<8x128xf32>
    %c0_14 = arith.constant 0 : index
    %c0_15 = arith.constant 0 : index
    %15 = vector.load %arg7[%c0_14, %c0_15] : memref<8x128xf32, #tpu.memory_space<vmem>>, vector<8x128xf32>
    %16 = arith.addf %14, %15 : vector<8x128xf32>
    %c0_16 = arith.constant 0 : index
    %c0_17 = arith.constant 0 : index
    %17 = vector.load %arg8[%c0_16, %c0_17] : memref<8x128xf32, #tpu.memory_space<vmem>>, vector<8x128xf32>
    tpu.vector_store %arg8[%c0_16, %c0_17], %16 {strides = array<i32>} : memref<8x128xf32, #tpu.memory_space<vmem>>, vector<8x128xf32>,
    return
  }
  func.func @transform_0(%arg0: i32) -> (i32, i32) {
    %c0_i32 = arith.constant 0 : i32
    %c0_i32_0 = arith.constant 0 : i32
    %c0_i32_1 = arith.constant 0 : i32
    return %c0_i32, %c0_i32_0 : i32, i32
  }
  func.func @transform_1(%arg0: i32) -> (i32, i32) {
    %c0_i32 = arith.constant 0 : i32
    %c0_i32_0 = arith.constant 0 : i32
    %c0_i32_1 = arith.constant 0 : i32
    return %c0_i32, %c0_i32_0 : i32, i32
  }
  func.func @transform_2(%arg0: i32) -> (i32, i32) {
    %c0_i32 = arith.constant 0 : i32
    %c0_i32_0 = arith.constant 0 : i32
    %c0_i32_1 = arith.constant 0 : i32
    return %c0_i32, %c0_i32_0 : i32, i32
  }
  func.func @transform_3(%arg0: i32) -> (i32, i32) {
    %c0_i32 = arith.constant 0 : i32
    %c0_i32_0 = arith.constant 0 : i32
    %c0_i32_1 = arith.constant 0 : i32
    return %c0_i32, %c0_i32_0 : i32, i32
  }
  func.func @transform_4(%arg0: i32) -> (i32, i32) {
    %c0_i32 = arith.constant 0 : i32
    %c0_i32_0 = arith.constant 0 : i32
    %c0_i32_1 = arith.constant 0 : i32
    return %c0_i32, %c0_i32_0 : i32, i32
  }
  func.func @transform_5(%arg0: i32) -> (i32, i32) {
    %c0_i32 = arith.constant 0 : i32
    %c0_i32_0 = arith.constant 0 : i32
    %c0_i32_1 = arith.constant 0 : i32
    return %c0_i32, %c0_i32_0 : i32, i32
  }
  func.func @transform_6(%arg0: i32) -> (i32, i32) {
    %c0_i32 = arith.constant 0 : i32
    %c0_i32_0 = arith.constant 0 : i32
    %c0_i32_1 = arith.constant 0 : i32
    return %c0_i32, %c0_i32_0 : i32, i32
  }
  func.func @transform_7(%arg0: i32) -> (i32, i32) {
    %c0_i32 = arith.constant 0 : i32
    %c0_i32_0 = arith.constant 0 : i32
    %c0_i32_1 = arith.constant 0 : i32
    return %c0_i32, %c0_i32_0 : i32, i32
  }
}

</mosaic_0001>

<bundles_post_ra>
// kernel: tpu_custom_call.1
= control target key start
LH: loop header
LB: loop body
LE: loop exit
PB: predicated region body
PF: predicated region fallthrough
CT: control target
= control target key end

     0   :  { %12 = vsyncpa [#allocation3], 0  ;;  %s2213_s0 = inlined_call_operand.hbm [shape: bf16[32,3072], index: 0, kind: input, shape index: {}]   ;;  %s2214_s1 = inlined_call_operand.vmem [shape: bf16[16,32], index: 1, kind: input, shape index: {}]   ;;  %s2215_s2 = inlined_call_operand.vmem [shape: f32[16,1], index: 2, kind: input, shape index: {}]   ;;  %s2216_s3 = inlined_call_operand.hbm [shape: f32[8,3072], index: 3, kind: input, shape index: {}]   ;;  %s2217_s4 = inlined_call_operand.vmem [shape: f32[8,16], index: 4, kind: input, shape index: {}]   ;;  %s2218_s5 = inlined_call_operand.vmem [shape: bf16[16,128], index: 5, kind: input, shape index: {}]   ;;  %s2219_s6 = inlined_call_operand.hbm [shape: f32[8,128], index: 6, kind: input, shape index: {}]   ;;  %s2220_s7 = inlined_call_operand.hbm [shape: f32[8,128], index: 7, kind: output, shape index: {}]  }
   0x1   :  { %13 = vsyncpa [#allocation6], 0 }
   0x2   :  { %14 = vsyncpa [#allocation4], 0  ;;  %s2046_s24 = smov [#allocation5]   ;;  %s2047_s26 = smov [#allocation2]  }
   0x3   :  { %s37_s25 = sshll.u32 %s2046_s24, 4  ;;  %s20_s27 = sshll.u32 %s2047_s26, 4  ;;  %s38_s25 = int_to_ptr.vmem [resolvable:$true] %s37_s25  ;;  %s21_s27 = int_to_ptr.vmem [resolvable:$true] %s20_s27 }
   0x4   :  { %s1968_s28 = scalar_lea.vmem %s38_s25, 3072  ;;  %p1973_p1 = scmp.lt.s32.totalorder %s38_s25, %s38_s25 }
   0x5   :  { %p1969_p0 = scmp.ne.s32.totalorder %s38_s25, %s1968_s28  ;;  %p1974_p2 = scmp.lt.s32.totalorder %s1968_s28, %s1968_s28 }
   0x7   :  { %p1975_p3 = por %p1974_p2, %p1973_p1 }
   0x9   :  { %p1976_p4 = pnand %p1975_p3, %p1969_p0 }
   0xb   :  { %1979 = shalt.err (!%p1976_p4)
}
   0xc   :  { %40 = dma.hbm_to_vmem [thread:$0]  %s2216_s3, 3072, %s38_s25, [#allocation6]  }
   0xd   :  { %s1988_s8 = scalar_lea.vmem %s21_s27, 6144  ;;  %p1993_p6 = scmp.lt.s32.totalorder %s21_s27, %s21_s27 }
   0xe   :  { %p1989_p5 = scmp.ne.s32.totalorder %s21_s27, %s1988_s8  ;;  %p1994_p7 = scmp.lt.s32.totalorder %s1988_s8, %s1988_s8 }
  0x10   :  { %p1995_p8 = por %p1994_p7, %p1993_p6 }
  0x12   :  { %p1996_p9 = pnand %p1995_p8, %p1989_p5 }
  0x14   :  { %1999 = shalt.err (!%p1996_p9)
}
  0x15   :  { %s2048_s9 = smov 1536   ;;  %s2049_s10 = smov 96  }
  0x16   :  { %26 = dma.hbm_to_vmem [thread:$0]  %s2213_s0, 6144, %s21_s27, [#allocation3], %s2048_s9, %s2048_s9, %s2049_s10  }
  0x17   :  { %s2050_s13 = smov [#allocation7]  }
  0x18   :  { %s51_s14 = sshll.u32 %s2050_s13, 4  ;;  %s52_s14 = int_to_ptr.vmem [resolvable:$true] %s51_s14 }
  0x19   :  { %s2008_s15 = scalar_lea.vmem %s52_s14, 128  ;;  %p2013_p11 = scmp.lt.s32.totalorder %s52_s14, %s52_s14 }
  0x1a   :  { %p2009_p10 = scmp.ne.s32.totalorder %s52_s14, %s2008_s15  ;;  %p2014_p12 = scmp.lt.s32.totalorder %s2008_s15, %s2008_s15 }
  0x1c   :  { %p2015_p13 = por %p2014_p12, %p2013_p11 }
  0x1e   :  { %p2016_p0 = pnand %p2015_p13, %p2009_p10 }
  0x20   :  { %2019 = shalt.err (!%p2016_p0)
}
  0x21   :  { %54 = dma.hbm_to_vmem [thread:$0]  %s2219_s6, 128, %s52_s14, [#allocation6]  }
  0x22   :  { %2040 = dma.done.wait [#allocation3], 6144  }
  0x23   :  { %2041 = vsyncadd [#allocation3], 4294961152 }
  0x24   :  { %2042 = dma.done.wait [#allocation6], 3200  }
  0x25   :  { %2043 = vsyncadd [#allocation6], 4294964096  ;;  %v2051_v0 = vmov 0   ;;  %v91_v1 = vld [vmem:[#allocation2 + $0xc0] sm:$0xff]  ;;  %v92_v3 = vld [vmem:[#allocation2 + $0xc8] sm:$0xff]  ;;  %vm372_vm0 = vcmask 261120  }
  0x26   :  { %408 = vmatprep.mubr.bf16.mxu0 %v2051_v0  ;;  %451 = vmatprep.mubr.bf16.mxu1 %v2051_v0  ;;  %v103_v2 = vld [vmem:[#allocation2 + $0x120] sm:$0xff]  ;;  %v104_v5 = vld [vmem:[#allocation2 + $0x128] sm:$0xff]  ;;  %v93_v15 = vld [vmem:[#allocation2 + $0xd0] sm:$0xff]  ;;  %vm2053_vm1 = vmmov 0   ;;  %vm1816_vm2 = vcmask 130048   ;;  %s2054_s22 = smov [#allocation8]  }
  0x27   :  { %1957 = vset.pattern.permute.xlu0 %v2051_v0  ;;  %v1903_v4 = vcombine.high %v91_v1, %v103_v2  ;;  %v1902_v6 = vcombine.low %v91_v1, %v103_v2  ;;  %v67_v7 = vld [vmem:[#allocation2] sm:$0xff]  ;;  %v1905_v9 = vcombine.high %v92_v3, %v104_v5  ;;  %v1904_v10 = vcombine.low %v92_v3, %v104_v5  ;;  %v68_v12 = vld [vmem:[#allocation2 + $0x8] sm:$0xff]  ;;  %v105_v17 = vld [vmem:[#allocation2 + $0x130] sm:$0xff]  ;;  %s1867_s23 = sshll.u32 %s2054_s22, 4  ;;  %s1868_s23 = int_to_ptr.vmem [resolvable:$true] %s1867_s23 }
  0x28   :  { %v79_v8 = vld [vmem:[#allocation2 + $0x60] sm:$0xff]  ;;  %v80_v13 = vld [vmem:[#allocation2 + $0x68] sm:$0xff]  ;;  %v94_v18 = vld [vmem:[#allocation2 + $0xd8] sm:$0xff]  ;;  %v1907_v21 = vcombine.high %v93_v15, %v105_v17  ;;  %v1906_v28 = vcombine.low %v93_v15, %v105_v17  ;;  %s2020_s24 = scalar_lea.vmem %s1868_s23, 128  ;;  %p2025_p2 = scmp.lt.s32.totalorder %s1868_s23, %s1868_s23 }
  0x29   :  { %v1879_v11 = vcombine.high %v67_v7, %v79_v8  ;;  %388 = vmatprep.subr.bf16.mxu0 %v1903_v4  ;;  %v1881_v14 = vcombine.high %v68_v12, %v80_v13  ;;  %431 = vmatprep.subr.bf16.mxu1 %v1905_v9  ;;  %v1878_v16 = vcombine.low %v67_v7, %v79_v8  ;;  %v106_v19 = vld [vmem:[#allocation2 + $0x138] sm:$0xff]  ;;  %v69_v23 = vld [vmem:[#allocation2 + $0x10] sm:$0xff]  ;;  %v2110_v25 = vld [vmem:[%s2214_s1] sm:$0xff]   ;;  %p2021_p1 = scmp.ne.s32.totalorder %s1868_s23, %s2020_s24  ;;  %p2026_p3 = scmp.lt.s32.totalorder %s2020_s24, %s2020_s24 }
  0x2a   :  { %389 = vmatpush1.bf16.msra.mxu0 %v1902_v6  ;;  %432 = vmatpush1.bf16.msra.mxu1 %v1904_v10  ;;  %v1880_v20 = vcombine.low %v68_v12, %v80_v13  ;;  %v1909_v22 = vcombine.high %v94_v18, %v106_v19  ;;  %v81_v24 = vld [vmem:[#allocation2 + $0x70] sm:$0xff]  ;;  %v70_v26 = vld [vmem:[#allocation2 + $0x18] sm:$0xff]  ;;  %v1908_v29 = vcombine.low %v94_v18, %v106_v19  ;;  %v95_v32 = vld [vmem:[#allocation2 + $0xe0] sm:$0xff] }
  0x2b   :  { %390 = vmatprep.subr.bf16.mxu0 %v1879_v11  ;;  %433 = vmatprep.subr.bf16.mxu1 %v1881_v14  ;;  %v82_v27 = vld [vmem:[#allocation2 + $0x78] sm:$0xff]  ;;  %v1883_v30 = vcombine.high %v69_v23, %v81_v24  ;;  %v107_v33 = vld [vmem:[#allocation2 + $0x140] sm:$0xff]  ;;  %v96_v34 = vld [vmem:[#allocation2 + $0xe8] sm:$0xff]  ;;  %v1882_v36 = vcombine.low %v69_v23, %v81_v24  ;;  %p2027_p4 = por %p2026_p3, %p2025_p2 }
  0x2c   :  { %v1885_v31 = vcombine.high %v70_v26, %v82_v27  ;;  %v108_v35 = vld [vmem:[#allocation2 + $0x148] sm:$0xff]  ;;  %v1884_v37 = vcombine.low %v70_v26, %v82_v27  ;;  %v1911_v38 = vcombine.high %v95_v32, %v107_v33  ;;  %v71_v40 = vld [vmem:[#allocation2 + $0x20] sm:$0xff]  ;;  %v1910_v44 = vcombine.low %v95_v32, %v107_v33  ;;  %v97_v49 = vld [vmem:[#allocation2 + $0xf0] sm:$0xff] }
  0x2d   :  { %v1913_v39 = vcombine.high %v96_v34, %v108_v35  ;;  %v83_v41 = vld [vmem:[#allocation2 + $0x80] sm:$0xff]  ;;  %v72_v42 = vld [vmem:[#allocation2 + $0x28] sm:$0xff]  ;;  %v1912_v45 = vcombine.low %v96_v34, %v108_v35  ;;  %v109_v50 = vld [vmem:[#allocation2 + $0x150] sm:$0xff]  ;;  %p2028_p5 = pnand %p2027_p4, %p2021_p1 }
  0x2e   :  { %391 = vmatpush1.bf16.msra.mxu0 %v1878_v16  ;;  %434 = vmatpush1.bf16.msra.mxu1 %v1880_v20  ;;  %v84_v43 = vld [vmem:[#allocation2 + $0x88] sm:$0xff]  ;;  %v1887_v46 = vcombine.high %v71_v40, %v83_v41  ;;  %v98_v51 = vld [vmem:[#allocation2 + $0xf8] sm:$0xff]  ;;  %v1886_v53 = vcombine.low %v71_v40, %v83_v41  ;;  %v115_v54 = vld [vmem:[%s2215_s2] sm:$0xff]  ;;  %v1915_v56 = vcombine.high %v97_v49, %v109_v50 }
  0x2f   :  { %474 = vmatprep.subr.bf16.mxu0 %v1907_v21  ;;  %517 = vmatprep.subr.bf16.mxu1 %v1909_v22  ;;  %v116_v47 = vld [vmem:[%s2215_s2 + $0x8] sm:$0xff]  ;;  %v1889_v48 = vcombine.high %v72_v42, %v84_v43  ;;  %v110_v52 = vld [vmem:[#allocation2 + $0x158] sm:$0xff]  ;;  %v1888_v55 = vcombine.low %v72_v42, %v84_v43  ;;  %v73_v58 = vld [vmem:[#allocation2 + $0x30] sm:$0xff]  ;;  %v1914_v62 = vcombine.low %v97_v49, %v109_v50 }
  0x30   :  { %124 = vperm.xlu0 %1957, %v116_v47   ;;  %v1917_v57 = vcombine.high %v98_v51, %v110_v52  ;;  %v85_v59 = vld [vmem:[#allocation2 + $0x90] sm:$0xff]  ;;  %v74_v60 = vld [vmem:[#allocation2 + $0x38] sm:$0xff]  ;;  %v1916_v63 = vcombine.low %v98_v51, %v110_v52  ;;  %v99_v3 = vld [vmem:[#allocation2 + $0x100] sm:$0xff] }
  0x31   :  { %1926 = vmatmul.mubr.msk.bf16.vlgmr.msra.gmra.mxu0 %vm372_vm0, %v2110_v25  ;;  %1927 = vmatmul.mubr.msk.bf16.vlgmr.msra.gmra.mxu1 %vm372_vm0, %v2110_v25  ;;  %v86_v61 = vld [vmem:[#allocation2 + $0x98] sm:$0xff]  ;;  %v1891_v1 = vcombine.high %v73_v58, %v85_v59  ;;  %v111_v4 = vld [vmem:[#allocation2 + $0x160] sm:$0xff]  ;;  %v100_v5 = vld [vmem:[#allocation2 + $0x108] sm:$0xff]  ;;  %v1890_v7 = vcombine.low %v73_v58, %v85_v59 }
  0x32   :  { %475 = vmatpush1.bf16.msra.mxu0 %v1906_v28  ;;  %518 = vmatpush1.bf16.msra.mxu1 %v1908_v29  ;;  %v1893_v2 = vcombine.high %v74_v60, %v86_v61  ;;  %v112_v6 = vld [vmem:[#allocation2 + $0x168] sm:$0xff]  ;;  %v1892_v8 = vcombine.low %v74_v60, %v86_v61  ;;  %v1919_v9 = vcombine.high %v99_v3, %v111_v4  ;;  %v75_v11 = vld [vmem:[#allocation2 + $0x40] sm:$0xff]  ;;  %v101_v19 = vld [vmem:[#allocation2 + $0x110] sm:$0xff] }
  0x33   :  { %476 = vmatprep.subr.bf16.mxu0 %v1883_v30  ;;  %519 = vmatprep.subr.bf16.mxu1 %v1885_v31  ;;  %v1921_v10 = vcombine.high %v100_v5, %v112_v6  ;;  %v87_v12 = vld [vmem:[#allocation2 + $0xa0] sm:$0xff]  ;;  %v76_v13 = vld [vmem:[#allocation2 + $0x48] sm:$0xff]  ;;  %v1918_v15 = vcombine.low %v99_v3, %v111_v4  ;;  %v1920_v16 = vcombine.low %v100_v5, %v112_v6  ;;  %v113_v20 = vld [vmem:[#allocation2 + $0x170] sm:$0xff] }
  0x34   :  { %494 = vmatprep.mubr.bf16.mxu0 %v2051_v0  ;;  %537 = vmatprep.mubr.bf16.mxu1 %v2051_v0  ;;  %v88_v14 = vld [vmem:[#allocation2 + $0xa8] sm:$0xff]  ;;  %v1895_v17 = vcombine.high %v75_v11, %v87_v12  ;;  %v102_v21 = vld [vmem:[#allocation2 + $0x118] sm:$0xff]  ;;  %v1894_v23 = vcombine.low %v75_v11, %v87_v12  ;;  %v1923_v26 = vcombine.high %v101_v19, %v113_v20  ;;  %v77_v28 = vld [vmem:[#allocation2 + $0x50] sm:$0xff] }
  0x35   :  { %119 = vperm.xlu0 %1957, %v115_v54   ;;  %v1897_v18 = vcombine.high %v76_v13, %v88_v14  ;;  %v114_v22 = vld [vmem:[#allocation2 + $0x178] sm:$0xff]  ;;  %v1896_v24 = vcombine.low %v76_v13, %v88_v14  ;;  %v89_v29 = vld [vmem:[#allocation2 + $0xb0] sm:$0xff]  ;;  %v1922_v32 = vcombine.low %v101_v19, %v113_v20 }
  0x36   :  { %477 = vmatpush1.bf16.msra.mxu0 %v1882_v36  ;;  %520 = vmatpush1.bf16.msra.mxu1 %v1884_v37  ;;  %v1925_v27 = vcombine.high %v102_v21, %v114_v22  ;;  %v78_v30 = vld [vmem:[#allocation2 + $0x58] sm:$0xff]  ;;  %v1924_v33 = vcombine.low %v102_v21, %v114_v22  ;;  %v1899_v34 = vcombine.high %v77_v28, %v89_v29  ;;  %v942_v19 = vld [vmem:[#allocation5 + $0x10] sm:$0xff] }
  0x37   :  { %560 = vmatprep.subr.bf16.mxu0 %v1911_v38  ;;  %603 = vmatprep.subr.bf16.mxu1 %v1913_v39  ;;  %v90_v31 = vld [vmem:[#allocation2 + $0xb8] sm:$0xff]  ;;  %v1898_v36 = vcombine.low %v77_v28, %v89_v29  ;;  %v941_v38 = vld [vmem:[#allocation5 + $0x8] sm:$0xff] }
  0x38   :  { %v1901_v35 = vcombine.high %v78_v30, %v90_v31  ;;  %v1900_v37 = vcombine.low %v78_v30, %v90_v31  ;;  %v943_v39 = vld [vmem:[#allocation5 + $0x18] sm:$0xff]  ;;  %v945_v31 = vld [vmem:[#allocation5 + $0x28] sm:$0xff] }
  0x39   :  { %1928 = vmatmul.mubr.msk.bf16.vlgmr.msra.gmra.mxu0 %vm372_vm0, %v2110_v25  ;;  %1929 = vmatmul.mubr.msk.bf16.vlgmr.msra.gmra.mxu1 %vm372_vm0, %v2110_v25 }
  0x3a   :  { %561 = vmatpush1.bf16.msra.mxu0 %v1910_v44  ;;  %604 = vmatpush1.bf16.msra.mxu1 %v1912_v45 }
  0x3b   :  { %562 = vmatprep.subr.bf16.mxu0 %v1887_v46  ;;  %605 = vmatprep.subr.bf16.mxu1 %v1889_v48 }
  0x3c   :  { %580 = vmatprep.mubr.bf16.mxu0 %v2051_v0  ;;  %623 = vmatprep.mubr.bf16.mxu1 %v2051_v0 }
  0x3e   :  { %563 = vmatpush1.bf16.msra.mxu0 %v1886_v53  ;;  %606 = vmatpush1.bf16.msra.mxu1 %v1888_v55 }
  0x3f   :  { %646 = vmatprep.subr.bf16.mxu0 %v1915_v56  ;;  %689 = vmatprep.subr.bf16.mxu1 %v1917_v57 }
  0x41   :  { %1930 = vmatmul.mubr.msk.bf16.vlgmr.msra.gmra.mxu0 %vm372_vm0, %v2110_v25  ;;  %1931 = vmatmul.mubr.msk.bf16.vlgmr.msra.gmra.mxu1 %vm372_vm0, %v2110_v25 }
  0x42   :  { %647 = vmatpush1.bf16.msra.mxu0 %v1914_v62  ;;  %690 = vmatpush1.bf16.msra.mxu1 %v1916_v63 }
  0x43   :  { %648 = vmatprep.subr.bf16.mxu0 %v1891_v1  ;;  %691 = vmatprep.subr.bf16.mxu1 %v1893_v2 }
  0x44   :  { %666 = vmatprep.mubr.bf16.mxu0 %v2051_v0  ;;  %709 = vmatprep.mubr.bf16.mxu1 %v2051_v0 }
  0x46   :  { %649 = vmatpush1.bf16.msra.mxu0 %v1890_v7  ;;  %692 = vmatpush1.bf16.msra.mxu1 %v1892_v8 }
  0x47   :  { %732 = vmatprep.subr.bf16.mxu0 %v1919_v9  ;;  %775 = vmatprep.subr.bf16.mxu1 %v1921_v10 }
  0x49   :  { %1932 = vmatmul.mubr.msk.bf16.vlgmr.msra.gmra.mxu0 %vm372_vm0, %v2110_v25  ;;  %1933 = vmatmul.mubr.msk.bf16.vlgmr.msra.gmra.mxu1 %vm372_vm0, %v2110_v25 }
  0x4a   :  { %733 = vmatpush1.bf16.msra.mxu0 %v1918_v15  ;;  %776 = vmatpush1.bf16.msra.mxu1 %v1920_v16  ;;  %v940_v16 = vld [vmem:[#allocation5] sm:$0xff] }
  0x4b   :  { %734 = vmatprep.subr.bf16.mxu0 %v1895_v17  ;;  %777 = vmatprep.subr.bf16.mxu1 %v1897_v18 }
  0x4c   :  { %752 = vmatprep.mubr.bf16.mxu0 %v2051_v0  ;;  %795 = vmatprep.mubr.bf16.mxu1 %v2051_v0 }
  0x4e   :  { %735 = vmatpush1.bf16.msra.mxu0 %v1894_v23  ;;  %778 = vmatpush1.bf16.msra.mxu1 %v1896_v24 }
  0x4f   :  { %818 = vmatprep.subr.bf16.mxu0 %v1923_v26  ;;  %861 = vmatprep.subr.bf16.mxu1 %v1925_v27 }
  0x51   :  { %1934 = vmatmul.mubr.msk.bf16.vlgmr.msra.gmra.mxu0 %vm372_vm0, %v2110_v25  ;;  %1935 = vmatmul.mubr.msk.bf16.vlgmr.msra.gmra.mxu1 %vm372_vm0, %v2110_v25 }
  0x52   :  { %819 = vmatpush1.bf16.msra.mxu0 %v1922_v32  ;;  %862 = vmatpush1.bf16.msra.mxu1 %v1924_v33  ;;  %v947_v32 = vld [vmem:[#allocation5 + $0x38] sm:$0xff] }
  0x53   :  { %820 = vmatprep.subr.bf16.mxu0 %v1899_v34  ;;  %863 = vmatprep.subr.bf16.mxu1 %v1901_v35 }
  0x54   :  { %838 = vmatprep.mubr.bf16.mxu0 %v2051_v0  ;;  %881 = vmatprep.mubr.bf16.mxu1 %v2051_v0 }
  0x56   :  { %821 = vmatpush1.bf16.msra.mxu0 %v1898_v36  ;;  %864 = vmatpush1.bf16.msra.mxu1 %v1900_v37 }
  0x59   :  { %1936 = vmatmul.mubr.msk.bf16.vlgmr.msra.gmra.mxu0 %vm372_vm0, %v2110_v25  ;;  %1937 = vmatmul.mubr.msk.bf16.vlgmr.msra.gmra.mxu1 %vm372_vm0, %v2110_v25 }
  0x5a   :  { %1028 = vmatprep.mubr.f32.mxu0 %v941_v38  ;;  %1098 = vmatprep.mubr.f32.mxu1 %v943_v39 }
  0xab   :  { %v2152_v40 = vpop.permute.xlu0 %124 }
  0xb0   :  { %v2154_v46 = vpop.permute.xlu0 %119 }
  0xf1   :  { %v410_v41 = vpop.f32.mrf.mxu0  ;;  %v453_v42 = vpop.f32.mrf.mxu1 }
  0xf2   :  { %v411_v60 = vadd.f32 %v410_v41, %v2154_v46  ;;  %v454_v1 = vadd.f32 %v453_v42, %v2154_v46 }
  0xf3   :  { %v412_v43 = vpop.f32.mrf.mxu0  ;;  %v455_v44 = vpop.f32.mrf.mxu1 }
  0xf4   :  { %v413_v49 = vadd.f32 %v412_v43, %v2154_v46  ;;  %v456_v52 = vadd.f32 %v455_v44, %v2154_v46  ;;  %v892_v6 = vmax.f32 %v411_v60, 0.0  ;;  %v894_v11 = vmax.f32 %v454_v1, 0.0 }
  0xf5   :  { %v414_v45 = vpop.f32.mrf.mxu0  ;;  %v457_v0 = vpop.f32.mrf.mxu1 }
  0xf6   :  { %v415_v47 = vadd.f32 %v414_v45, %v2152_v40  ;;  %v458_v25 = vadd.f32 %v457_v0, %v2152_v40  ;;  %v893_v61 = vmax.f32 %v413_v49, 0.0  ;;  %v895_v2 = vmax.f32 %v456_v52, 0.0 }
  0xf7   :  { %v416_v48 = vpop.f32.mrf.mxu0  ;;  %v459_v51 = vpop.f32.mrf.mxu1 }
  0xf8   :  { %v417_v50 = vadd.f32 %v416_v48, %v2152_v40  ;;  %v460_v53 = vadd.f32 %v459_v51, %v2152_v40  ;;  %v916_v57 = vmax.f32 %v415_v47, 0.0  ;;  %v918_v62 = vmax.f32 %v458_v25, 0.0  ;;  %v944_v48 = vld [vmem:[#allocation5 + $0x20] sm:$0xff] }
  0xf9   :  { %v496_v54 = vpop.f32.mrf.mxu0  ;;  %v539_v56 = vpop.f32.mrf.mxu1 }
  0xfa   :  { %v917_v55 = vmax.f32 %v417_v50, 0.0  ;;  %v919_v58 = vmax.f32 %v460_v53, 0.0  ;;  %v497_v22 = vadd.f32 %v496_v54, %v2154_v46  ;;  %v540_v23 = vadd.f32 %v539_v56, %v2154_v46  ;;  %v946_v50 = vld [vmem:[#allocation5 + $0x30] sm:$0xff] }
  0xfb   :  { %v498_v59 = vpop.f32.mrf.mxu0  ;;  %v541_v63 = vpop.f32.mrf.mxu1 }
  0xfc   :  { %992 = vmatprep.subr.mxu0 %v917_v55  ;;  %1062 = vmatprep.subr.mxu1 %v919_v58  ;;  %v499_v12 = vadd.f32 %v498_v59, %v2154_v46  ;;  %v542_v13 = vadd.f32 %v541_v63, %v2154_v46  ;;  %v896_v35 = vmax.f32 %v497_v22, 0.0  ;;  %v898_v36 = vmax.f32 %v540_v23, 0.0  ;;  %v949_v58 = vld [vmem:[#allocation5 + $0x48] sm:$0xff] }
  0xfd   :  { %v500_v3 = vpop.f32.mrf.mxu0  ;;  %993 = vmatpush1.xpose.msra.mxu0 %v916_v57  ;;  %v543_v4 = vpop.f32.mrf.mxu1  ;;  %1063 = vmatpush1.xpose.msra.mxu1 %v918_v62  ;;  %v953_v23 = vld [vmem:[#allocation5 + $0x68] sm:$0xff] }
  0xfe   :  { %994 = vmatprep.subr.mxu0 %v893_v61  ;;  %1064 = vmatprep.subr.mxu1 %v895_v2  ;;  %v501_v7 = vadd.f32 %v500_v3, %v2152_v40  ;;  %v544_v8 = vadd.f32 %v543_v4, %v2152_v40  ;;  %v897_v28 = vmax.f32 %v499_v12, 0.0  ;;  %v899_v29 = vmax.f32 %v542_v13, 0.0  ;;  %v951_v61 = vld [vmem:[#allocation5 + $0x58] sm:$0xff]  ;;  %v948_v12 = vld [vmem:[#allocation5 + $0x40] sm:$0xff] }
  0xff   :  { %v502_v5 = vpop.f32.mrf.mxu0  ;;  %v545_v10 = vpop.f32.mrf.mxu1 }
 0x100   :  { %v503_v9 = vadd.f32 %v502_v5, %v2152_v40  ;;  %v546_v14 = vadd.f32 %v545_v10, %v2152_v40  ;;  %v920_v24 = vmax.f32 %v501_v7, 0.0  ;;  %v922_v26 = vmax.f32 %v544_v8, 0.0 }
 0x101   :  { %v582_v15 = vpop.f32.mrf.mxu0  ;;  %995 = vmatpush1.xpose.msra.mxu0 %v892_v6  ;;  %v625_v18 = vpop.f32.mrf.mxu1  ;;  %1065 = vmatpush1.xpose.msra.mxu1 %v894_v11 }
 0x102   :  { %v921_v17 = vmax.f32 %v503_v9, 0.0  ;;  %v923_v20 = vmax.f32 %v546_v14, 0.0  ;;  %v583_v51 = vadd.f32 %v582_v15, %v2154_v46  ;;  %v626_v54 = vadd.f32 %v625_v18, %v2154_v46  ;;  %v950_v15 = vld [vmem:[#allocation5 + $0x50] sm:$0xff] }
 0x103   :  { %v584_v21 = vpop.f32.mrf.mxu0  ;;  %v627_v27 = vpop.f32.mrf.mxu1 }
 0x104   :  { %1029 = vmatmul.mubr.f32.vlgmr.msra.gmra.mxu0 %v940_v16  ;;  %1132 = vmatprep.subr.mxu0 %v921_v17  ;;  %v585_v41 = vadd.f32 %v584_v21, %v2154_v46  ;;  %v628_v45 = vadd.f32 %v627_v27, %v2154_v46  ;;  %v900_v63 = vmax.f32 %v583_v51, 0.0  ;;  %v902_v4 = vmax.f32 %v626_v54, 0.0  ;;  %v955_v27 = vld [vmem:[#allocation5 + $0x78] sm:$0xff] }
 0x105   :  { %1202 = vmatprep.subr.mxu1 %v923_v20  ;;  %v586_v30 = vpop.f32.mrf.mxu0  ;;  %1099 = vmatmul.mubr.f32.vlgmr.msra.gmra.mxu1 %v942_v19  ;;  %v629_v33 = vpop.f32.mrf.mxu1 }
 0x106   :  { %1133 = vmatpush1.xpose.msra.mxu0 %v920_v24  ;;  %1203 = vmatpush1.xpose.msra.mxu1 %v922_v26  ;;  %v587_v37 = vadd.f32 %v586_v30, %v2152_v40  ;;  %v630_v42 = vadd.f32 %v629_v33, %v2152_v40  ;;  %v901_v55 = vmax.f32 %v585_v41, 0.0  ;;  %v903_v59 = vmax.f32 %v628_v45, 0.0  ;;  %v954_v45 = vld [vmem:[#allocation5 + $0x70] sm:$0xff] }
 0x107   :  { %1134 = vmatprep.subr.mxu0 %v897_v28  ;;  %1204 = vmatprep.subr.mxu1 %v899_v29  ;;  %v588_v34 = vpop.f32.mrf.mxu0  ;;  %v631_v39 = vpop.f32.mrf.mxu1 }
 0x108   :  { %v589_v38 = vadd.f32 %v588_v34, %v2152_v40  ;;  %1168 = vmatprep.mubr.f32.mxu0 %v945_v31  ;;  %1238 = vmatprep.mubr.f32.mxu1 %v947_v32  ;;  %v632_v43 = vadd.f32 %v631_v39, %v2152_v40  ;;  %v924_v52 = vmax.f32 %v587_v37, 0.0  ;;  %v926_v56 = vmax.f32 %v630_v42, 0.0  ;;  %v952_v42 = vld [vmem:[#allocation5 + $0x60] sm:$0xff] }
 0x109   :  { %v668_v44 = vpop.f32.mrf.mxu0  ;;  %v711_v47 = vpop.f32.mrf.mxu1 }
 0x10a   :  { %v925_v0 = vmax.f32 %v589_v38, 0.0  ;;  %1135 = vmatpush1.xpose.msra.mxu0 %v896_v35  ;;  %1205 = vmatpush1.xpose.msra.mxu1 %v898_v36  ;;  %v927_v49 = vmax.f32 %v632_v43, 0.0  ;;  %v669_v16 = vadd.f32 %v668_v44, %v2154_v46  ;;  %v712_v19 = vadd.f32 %v711_v47, %v2154_v46 }
 0x10b   :  { %v670_v25 = vpop.f32.mrf.mxu0  ;;  %v713_v53 = vpop.f32.mrf.mxu1 }
 0x10c   :  { %1272 = vmatprep.subr.mxu0 %v925_v0  ;;  %1342 = vmatprep.subr.mxu1 %v927_v49  ;;  %v671_v5 = vadd.f32 %v670_v25, %v2154_v46  ;;  %v714_v9 = vadd.f32 %v713_v53, %v2154_v46  ;;  %v904_v29 = vmax.f32 %v669_v16, 0.0  ;;  %v906_v33 = vmax.f32 %v712_v19, 0.0  ;;  %v960_v16 = vld [vmem:[#allocation5 + $0xa0] sm:$0xff] }
 0x10d   :  { %1169 = vmatmul.mubr.f32.vlgmr.msra.gmra.mxu0 %v944_v48  ;;  %v672_v57 = vpop.f32.mrf.mxu0  ;;  %v715_v60 = vpop.f32.mrf.mxu1  ;;  %1239 = vmatmul.mubr.f32.vlgmr.msra.gmra.mxu1 %v946_v50 }
 0x10e   :  { %1273 = vmatpush1.xpose.msra.mxu0 %v924_v52  ;;  %1343 = vmatpush1.xpose.msra.mxu1 %v926_v56  ;;  %v673_v1 = vadd.f32 %v672_v57, %v2152_v40  ;;  %v716_v6 = vadd.f32 %v715_v60, %v2152_v40  ;;  %v905_v20 = vmax.f32 %v671_v5, 0.0  ;;  %v907_v24 = vmax.f32 %v714_v9, 0.0  ;;  %v957_v52 = vld [vmem:[#allocation5 + $0x88] sm:$0xff] }
 0x10f   :  { %1274 = vmatprep.subr.mxu0 %v901_v55  ;;  %v674_v62 = vpop.f32.mrf.mxu0  ;;  %1344 = vmatprep.subr.mxu1 %v903_v59  ;;  %v717_v3 = vpop.f32.mrf.mxu1  ;;  %v959_v55 = vld [vmem:[#allocation5 + $0x98] sm:$0xff] }
 0x110   :  { %v675_v2 = vadd.f32 %v674_v62, %v2152_v40  ;;  %1308 = vmatprep.mubr.f32.mxu0 %v949_v58  ;;  %v718_v7 = vadd.f32 %v717_v3, %v2152_v40  ;;  %1378 = vmatprep.mubr.f32.mxu1 %v951_v61  ;;  %v928_v17 = vmax.f32 %v673_v1, 0.0  ;;  %v930_v21 = vmax.f32 %v716_v6, 0.0  ;;  %v958_v6 = vld [vmem:[#allocation5 + $0x90] sm:$0xff] }
 0x111   :  { %v754_v8 = vpop.f32.mrf.mxu0  ;;  %v797_v11 = vpop.f32.mrf.mxu1 }
 0x112   :  { %v929_v10 = vmax.f32 %v675_v2, 0.0  ;;  %1275 = vmatpush1.xpose.msra.mxu0 %v900_v63  ;;  %v931_v13 = vmax.f32 %v718_v7, 0.0  ;;  %1345 = vmatpush1.xpose.msra.mxu1 %v902_v4  ;;  %v755_v0 = vadd.f32 %v754_v8, %v2154_v46  ;;  %v798_v49 = vadd.f32 %v797_v11, %v2154_v46  ;;  %v956_v4 = vld [vmem:[#allocation5 + $0x80] sm:$0xff] }
 0x113   :  { %v756_v14 = vpop.f32.mrf.mxu0  ;;  %v799_v18 = vpop.f32.mrf.mxu1 }
 0x114   :  { %1412 = vmatprep.subr.mxu0 %v929_v10  ;;  %1482 = vmatprep.subr.mxu1 %v931_v13  ;;  %v757_v34 = vadd.f32 %v756_v14, %v2154_v46  ;;  %v800_v38 = vadd.f32 %v799_v18, %v2154_v46  ;;  %v908_v57 = vmax.f32 %v755_v0, 0.0  ;;  %v910_v61 = vmax.f32 %v798_v49, 0.0  ;;  %v963_v13 = vld [vmem:[#allocation5 + $0xb8] sm:$0xff] }
 0x115   :  { %1309 = vmatmul.mubr.f32.vlgmr.msra.gmra.mxu0 %v948_v12  ;;  %v758_v22 = vpop.f32.mrf.mxu0  ;;  %v801_v26 = vpop.f32.mrf.mxu1  ;;  %1379 = vmatmul.mubr.f32.vlgmr.msra.gmra.mxu1 %v950_v15  ;;  %v2052_v18 = vmov 0.0  }
 0x116   :  { %1413 = vmatpush1.xpose.msra.mxu0 %v928_v17  ;;  %1483 = vmatpush1.xpose.msra.mxu1 %v930_v21  ;;  %v759_v30 = vadd.f32 %v758_v22, %v2152_v40  ;;  %v802_v35 = vadd.f32 %v801_v26, %v2152_v40  ;;  %v909_v25 = vmax.f32 %v757_v34, 0.0  ;;  %v911_v53 = vmax.f32 %v800_v38, 0.0  ;;  %v1959_v17 = vld [vmem:[%s2218_s5] sm:$0xff]  }
 0x117   :  { %1414 = vmatprep.subr.mxu0 %v905_v20  ;;  %v760_v28 = vpop.f32.mrf.mxu0  ;;  %1484 = vmatprep.subr.mxu1 %v907_v24  ;;  %v803_v32 = vpop.f32.mrf.mxu1 }
 0x118   :  { %v761_v31 = vadd.f32 %v760_v28, %v2152_v40  ;;  %1448 = vmatprep.mubr.f32.mxu0 %v953_v23  ;;  %v804_v36 = vadd.f32 %v803_v32, %v2152_v40  ;;  %1518 = vmatprep.mubr.f32.mxu1 %v955_v27  ;;  %v932_v47 = vmax.f32 %v759_v30, 0.0  ;;  %v934_v50 = vmax.f32 %v802_v35, 0.0 }
 0x119   :  { %v840_v37 = vpop.f32.mrf.mxu0  ;;  %v883_v41 = vpop.f32.mrf.mxu1 }
 0x11a   :  { %v933_v39 = vmax.f32 %v761_v31, 0.0  ;;  %1415 = vmatpush1.xpose.msra.mxu0 %v904_v29  ;;  %v935_v43 = vmax.f32 %v804_v36, 0.0  ;;  %1485 = vmatpush1.xpose.msra.mxu1 %v906_v33  ;;  %v841_v7 = vadd.f32 %v840_v37, %v2154_v46  ;;  %v884_v9 = vadd.f32 %v883_v41, %v2154_v46 }
 0x11b   :  { %v842_v44 = vpop.f32.mrf.mxu0  ;;  %v885_v48 = vpop.f32.mrf.mxu1 }
 0x11c   :  { %1552 = vmatprep.subr.mxu0 %v933_v39  ;;  %1622 = vmatprep.subr.mxu1 %v935_v43  ;;  %v843_v62 = vadd.f32 %v842_v44, %v2154_v46  ;;  %v886_v2 = vadd.f32 %v885_v48, %v2154_v46  ;;  %v912_v14 = vmax.f32 %v841_v7, 0.0  ;;  %v914_v15 = vmax.f32 %v884_v9, 0.0  ;;  %v962_v46 = vld [vmem:[#allocation5 + $0xb0] sm:$0xff] }
 0x11d   :  { %1449 = vmatmul.mubr.f32.vlgmr.msra.gmra.mxu0 %v952_v42  ;;  %v844_v51 = vpop.f32.mrf.mxu0  ;;  %v887_v54 = vpop.f32.mrf.mxu1  ;;  %1519 = vmatmul.mubr.f32.vlgmr.msra.gmra.mxu1 %v954_v45 }
 0x11e   :  { %1553 = vmatpush1.xpose.msra.mxu0 %v932_v47  ;;  %1623 = vmatpush1.xpose.msra.mxu1 %v934_v50  ;;  %v845_v58 = vadd.f32 %v844_v51, %v2152_v40  ;;  %v888_v63 = vadd.f32 %v887_v54, %v2152_v40  ;;  %v913_v10 = vmax.f32 %v843_v62, 0.0  ;;  %v915_v12 = vmax.f32 %v886_v2, 0.0 }
 0x11f   :  { %1554 = vmatprep.subr.mxu0 %v909_v25  ;;  %v846_v56 = vpop.f32.mrf.mxu0  ;;  %1624 = vmatprep.subr.mxu1 %v911_v53  ;;  %v889_v60 = vpop.f32.mrf.mxu1 }
 0x120   :  { %v847_v59 = vadd.f32 %v846_v56, %v2152_v40  ;;  %1588 = vmatprep.mubr.f32.mxu0 %v957_v52  ;;  %v890_v1 = vadd.f32 %v889_v60, %v2152_v40  ;;  %1658 = vmatprep.mubr.f32.mxu1 %v959_v55  ;;  %v936_v8 = vmax.f32 %v845_v58, 0.0  ;;  %v938_v11 = vmax.f32 %v888_v63, 0.0  ;;  %v961_v40 = vld [vmem:[#allocation5 + $0xa8] sm:$0xff]  ;;  %v1804_v52 = vld [vmem:[%s2217_s4] sm:$0xff] }
 0x121   :  { %v1809_v58 = vld [vmem:[#allocation7] sm:$0xff] }
 0x122   :  { %v937_v3 = vmax.f32 %v847_v59, 0.0  ;;  %1555 = vmatpush1.xpose.msra.mxu0 %v908_v57  ;;  %v939_v5 = vmax.f32 %v890_v1, 0.0  ;;  %1625 = vmatpush1.xpose.msra.mxu1 %v910_v61 }
 0x124   :  { %1692 = vmatprep.subr.mxu0 %v937_v3  ;;  %1762 = vmatprep.subr.mxu1 %v939_v5 }
 0x125   :  { %1589 = vmatmul.mubr.f32.vlgmr.msra.gmra.mxu0 %v956_v4  ;;  %1659 = vmatmul.mubr.f32.vlgmr.msra.gmra.mxu1 %v958_v6 }
 0x126   :  { %1693 = vmatpush1.xpose.msra.mxu0 %v936_v8  ;;  %1763 = vmatpush1.xpose.msra.mxu1 %v938_v11 }
 0x127   :  { %1694 = vmatprep.subr.mxu0 %v913_v10  ;;  %1764 = vmatprep.subr.mxu1 %v915_v12 }
 0x128   :  { %1728 = vmatprep.mubr.f32.mxu0 %v961_v40  ;;  %1798 = vmatprep.mubr.f32.mxu1 %v963_v13 }
 0x12a   :  { %1695 = vmatpush1.xpose.msra.mxu0 %v912_v14  ;;  %1765 = vmatpush1.xpose.msra.mxu1 %v914_v15 }
 0x12b   :  { %1942 = vmatprep.subr.bf16.mxu0 %v2052_v18 }
 0x12d   :  { %1729 = vmatmul.mubr.f32.vlgmr.msra.gmra.mxu0 %v960_v16  ;;  %1799 = vmatmul.mubr.f32.vlgmr.msra.gmra.mxu1 %v962_v46 }
 0x12e   :  { %1943 = vmatpush3.bf16.msra.mxu0 %v1959_v17  ;;  %1944 = vmatprep.mubr.msk.bf16.mxu0 %vm2053_vm1, %v2052_v18 }
 0x1c4   :  { %v1030_v19 = vpop.f32.mrf.mxu0 }
 0x1c5   :  { %v1100_v20 = vpop.f32.mrf.mxu1 }
 0x1c6   :  { %v1032_v21 = vpop.f32.mrf.mxu0  ;;  %v1101_v28 = vadd.f32 %v1100_v20, %v1030_v19 }
 0x1c7   :  { %v1102_v22 = vpop.f32.mrf.mxu1 }
 0x1cd   :  { %v1170_v23 = vpop.f32.mrf.mxu0  ;;  %v1240_v24 = vpop.f32.mrf.mxu1 }
 0x1ce   :  { %v1171_v30 = vadd.f32 %v1170_v23, %v1101_v28 }
 0x1cf   :  { %v1172_v26 = vpop.f32.mrf.mxu0  ;;  %v1242_v27 = vpop.f32.mrf.mxu1 }
 0x1d0   :  { %v1241_v34 = vadd.f32 %v1240_v24, %v1171_v30 }
 0x1d5   :  { %v1310_v29 = vpop.f32.mrf.mxu0  ;;  %v1380_v31 = vpop.f32.mrf.mxu1 }
 0x1d6   :  { %v1311_v35 = vadd.f32 %v1310_v29, %v1241_v34 }
 0x1d7   :  { %v1312_v32 = vpop.f32.mrf.mxu0  ;;  %v1382_v33 = vpop.f32.mrf.mxu1 }
 0x1d8   :  { %v1381_v39 = vadd.f32 %v1380_v31, %v1311_v35 }
 0x1dd   :  { %v1450_v36 = vpop.f32.mrf.mxu0  ;;  %v1520_v37 = vpop.f32.mrf.mxu1 }
 0x1de   :  { %v1451_v42 = vadd.f32 %v1450_v36, %v1381_v39 }
 0x1df   :  { %v1452_v38 = vpop.f32.mrf.mxu0  ;;  %v1522_v41 = vpop.f32.mrf.mxu1 }
 0x1e0   :  { %v1521_v44 = vadd.f32 %v1520_v37, %v1451_v42 }
 0x1e5   :  { %v1590_v43 = vpop.f32.mrf.mxu0  ;;  %v1660_v45 = vpop.f32.mrf.mxu1 }
 0x1e6   :  { %v1591_v47 = vadd.f32 %v1590_v43, %v1521_v44 }
 0x1e7   :  { %v1592_v0 = vpop.f32.mrf.mxu0  ;;  %v1662_v48 = vpop.f32.mrf.mxu1 }
 0x1e8   :  { %v1661_v49 = vadd.f32 %v1660_v45, %v1591_v47 }
 0x1ed   :  { %v1730_v25 = vpop.f32.mrf.mxu0  ;;  %v1800_v51 = vpop.f32.mrf.mxu1 }
 0x1ee   :  { %v1731_v50 = vadd.f32 %v1730_v25, %v1661_v49 }
 0x1ef   :  { %v1732_v53 = vpop.f32.mrf.mxu0  ;;  %v1802_v55 = vpop.f32.mrf.mxu1 }
 0x1f0   :  { %v1801_v54 = vadd.f32 %v1800_v51, %v1731_v50 }
 0x1f2   :  { %v1805_v56 = vmul.f32 %v1804_v52, %v1801_v54 }
 0x1f4   :  { %v1806_v57 = vpack.c.bf16 %v1805_v56, %v1805_v56 }
 0x1f6   :  { %1945 = vmatmul.mubr.msk.bf16.vlgmr.msra.gmra.mxu0 %vm1816_vm2, %v1806_v57 }
 0x2b6   :  { %v1854_v59 = vpop.f32.mrf.mxu0 }
 0x2b7   :  { %v1855_v60 = vadd.f32 %v1854_v59, %v1809_v58 }
 0x2b8   :  { %v1946_v61 = vpop.f32.mrf.mxu0 }
 0x2b9   :  { %1860 = vst [vmem:[#allocation8] sm:$0xff] %v1855_v60 }
 0x2ba   :  { %v1857_v62 = vpop.f32.mrf.mxu0 }
 0x2bb   :  { %2031 = shalt.err (!%p2028_p5)
}
 0x2bc   :  { %1870 = dma.vmem_to_hbm [thread:$0]  %s1868_s23, 128, %s2220_s7, [#allocation4]   ;;  %v1947_v63 = vpop.f32.mrf.mxu0 }
 0x2bd   :  { %2044 = dma.done.wait [#allocation4], 128  }
 0x2be   :  { %2045 = vsyncadd [#allocation4], 4294967168 }
 0x2bf   :  { %1874 = vsyncpa [#allocation3], 1 }
 0x2c0   :  { %1875 = vsyncpa [#allocation6], 1 }
 0x2c1   :  { %1876 = vsyncpa [#allocation4], 1 }

</bundles_post_ra>
